<compile_context>
chip_gen: v5e
topology: v5e:2x2
jax: 0.10.0
libtpu: 0.0.40
codegen_flags: <defaults>
</compile_context>

<pallas_src>
import functools
import math

import jax
import jax.numpy as jnp
from jax.experimental import pallas as pl
from jax.experimental.pallas import tpu as pltpu


def _bce_partial_kernel(seg_ref, preds_ref, labels_ref, mask_ref, out_ref,
                        num_ref, den_ref, *, n_rows, block_rows, groups,
                        compute_dtype):
    """Accumulates [sum(bce * mask), sum(mask)] over this core's row range."""
    i = pl.program_id(1)                       # reduction ("arbitrary") axis

    @pl.when(i == 0)
    def _init():
        num_ref[...] = jnp.zeros_like(num_ref)
        den_ref[...] = jnp.zeros_like(den_ref)

    x = preds_ref[...].astype(compute_dtype)   # (block_rows, width)
    y = labels_ref[...].astype(compute_dtype)
    seg = seg_ref[...]                         # (width, groups) constant 0/1

    # Numerically stable BCEWithLogits: max(x,0) - x*y + log1p(exp(-|x|)).
    # The whole elementwise/EUP stage stays in `compute_dtype` (bf16 on
    # v6e/v7x for bf16 inputs); the MXU matmul below accumulates in f32.
    bce = (jnp.maximum(x, 0.0) - x * y + jnp.log1p(jnp.exp(-jnp.abs(x))))

    # Per-(b,n)-row class sums via one MXU matmul with the constant 0/1
    # segment matrix (kept resident in VMEM via its constant block index).
    # Mask is applied AFTER the class reduction (groups << classes).
    row_sums = jnp.dot(bce, seg, preferred_element_type=jnp.float32)
    m = mask_ref[...].astype(jnp.float32)      # (block_rows, groups)

    # Intended (unclamped) tile index -> starting folded-row of this tile.
    blk = pl.program_id(0) * pl.num_programs(1) + i
    row0 = blk * block_rows
    is_interior = row0 + block_rows <= n_rows

    @pl.when(is_interior)
    def _interior():
        # Fast path: every row valid -> no iota / compares / selects.
        # Only a sublane-axis reduce per step; cross-lane reduce deferred.
        num_ref[...] += jnp.sum(row_sums * m, axis=0, keepdims=True)
        den_ref[...] += jnp.sum(m, axis=0, keepdims=True)

    @pl.when(jnp.logical_not(is_interior))
    def _edge():
        # Ragged last tile or clamped phantom tile: zero out-of-range rows
        # with a select so garbage (possibly NaN) never reaches the sums.
        rid = row0 + jax.lax.broadcasted_iota(
            jnp.int32, (block_rows, groups), 0)
        valid = rid < n_rows
        num_ref[...] += jnp.sum(jnp.where(valid, row_sums * m, 0.0),
                                axis=0, keepdims=True)
        den_ref[...] += jnp.sum(jnp.where(valid, m, 0.0),
                                axis=0, keepdims=True)

    @pl.when(i == pl.num_programs(1) - 1)
    def _finalize():
        # Single cross-lane reduce + SMEM scalar write per core.
        out_ref[0, 0] = jnp.sum(num_ref[...])
        out_ref[0, 1] = jnp.sum(den_ref[...])


def _tpu_defaults():
    """Best-effort TPU generation / VMEM detection with safe fallbacks."""
    kind = ""
    try:
        kind = jax.devices()[0].device_kind.lower()
    except Exception:
        pass
    vmem_cap = None
    try:
        vmem_cap = int(pltpu.get_tpu_info().vmem_capacity_bytes)
    except Exception:
        vmem_cap = None
    if vmem_cap is None:
        # v4/v5/v6 generations have 128 MiB VMEM per TensorCore; be
        # conservative (64 MiB, v7x-sized) when the generation is unknown.
        if any(t in kind for t in ("v4", "v5", "v6")):
            vmem_cap = 128 * 1024 * 1024
        else:
            vmem_cap = 64 * 1024 * 1024
    is_v5_or_older = any(t in kind for t in ("v2", "v3", "v4", "v5"))
    is_v7 = ("v7" in kind) or ("7x" in kind)
    return vmem_cap, is_v5_or_older, is_v7


def bce_loss(preds, labels, mask, *, block_rows=None, num_partials=None):
    """Masked, normalized BCE-with-logits loss (scalar), Pallas TPU kernel."""
    B, N, C = preds.shape
    assert labels.shape == (B, N, C) and mask.shape == (B, N)

    vmem_cap, is_v5_or_older, is_v7 = _tpu_defaults()
    if num_partials is None:
        # 2 partial sums only when the leading "parallel" axis can map onto
        # two TensorCores (v7x); on 1-TC chips it would just serialize.
        num_partials = 2 if is_v7 else 1

    # bf16 stays bf16 through VPU/EUP/MXU on chips with bf16 vector units
    # (v6e/v7x); on v5e and older upcast to f32 (no bf16 VALU/EUP there).
    use_bf16 = (preds.dtype == jnp.bfloat16 and labels.dtype == jnp.bfloat16
                and not is_v5_or_older)
    compute_dtype = jnp.bfloat16 if use_bf16 else jnp.float32

    # Lane folding: fold g consecutive (b, n) rows into the lane dimension so
    # width = g*C is a multiple of 128 whenever (B*N) allows it (handles any
    # C via gcd, e.g. 32 -> g=4, 48 -> g=8, 200 -> g=16).  Fallback halves g
    # until it divides B*N (worst case g=1: correct, just less lane-dense).
    g = 128 // math.gcd(C, 128)
    while g > 1 and (B * N) % g != 0:
        g //= 2
    groups = max(g, 1)
    rows = (B * N) // groups
    width = groups * C

    preds2 = preds.reshape(rows, width)        # contiguous reshapes: free
    labels2 = labels.reshape(rows, width)
    mask2 = mask.reshape(rows, groups)
    if not jnp.issubdtype(mask2.dtype, jnp.floating):
        mask2 = mask2.astype(jnp.float32)      # bool/int mask -> float (tiny)

    # Constant 0/1 segment matrix (flat column -> folded (b,n) group), built
    # once in the wrapper; 0/1 is exact in bf16.
    seg = (jnp.arange(width, dtype=jnp.int32)[:, None] // C
           == jnp.arange(groups, dtype=jnp.int32)[None, :]
           ).astype(compute_dtype)

    # Generation-aware, dtype-aware tiling.  Resident footprint is roughly
    # 2 inputs x 2 buffers x block + the bce intermediate, so target
    # ~vmem_limit/8 bytes per input block:
    #   128 MiB VMEM (v5e/v6e): 96 MiB scoped limit, ~12 MiB/input block.
    #    64 MiB VMEM (v7x/TC) : 48 MiB scoped limit, ~ 6 MiB/input block.
    vmem_limit = min(vmem_cap * 3 // 4, 96 * 1024 * 1024)
    itemsize = jnp.dtype(preds.dtype).itemsize
    if block_rows is None:
        block_bytes = vmem_limit // 8
        block_rows = max(1, block_bytes // (width * itemsize))
    block_rows = min(int(block_rows), rows)
    if block_rows < rows:
        align = 32 if block_rows >= 32 else 8  # sublane + sub-32-bit packing
        block_rows = max(align, (block_rows // align) * align)
        block_rows = min(block_rows, rows)

    total_blocks = pl.cdiv(rows, block_rows)
    inner = pl.cdiv(total_blocks, num_partials)   # reduction steps per core

    def row_block(p, i):
        # Clamp trailing phantom tiles (p*inner + i >= total_blocks) onto the
        # last real tile; the kernel zeroes their contribution via the
        # unclamped row index (keep this pairing in sync with the kernel!).
        return (jnp.minimum(p * inner + i, total_blocks - 1), 0)

    kernel = functools.partial(
        _bce_partial_kernel, n_rows=rows, block_rows=block_rows,
        groups=groups, compute_dtype=compute_dtype)

    partials = pl.pallas_call(
        kernel,
        out_shape=jax.ShapeDtypeStruct((num_partials, 2), jnp.float32),
        grid=(num_partials, inner),
        in_specs=[
            pl.BlockSpec((width, groups), lambda p, i: (0, 0)),  # seg resident
            pl.BlockSpec((block_rows, width), row_block),
            pl.BlockSpec((block_rows, width), row_block),
            pl.BlockSpec((block_rows, groups), row_block),
        ],
        out_specs=pl.BlockSpec((1, 2), lambda p, i: (p, 0),
                               memory_space=pltpu.MemorySpace.SMEM),
        scratch_shapes=[pltpu.VMEM((1, groups), jnp.float32),   # masked-bce
                        pltpu.VMEM((1, groups), jnp.float32)],  # mask sum
        compiler_params=pltpu.CompilerParams(
            dimension_semantics=("parallel", "arbitrary"),
            vmem_limit_bytes=vmem_limit),
    )(seg, preds2, labels2, mask2)

    num = jnp.sum(partials[:, 0])
    den = jnp.sum(partials[:, 1])
    return num / ((den + 1e-10) * (B * C))


def bce_loss_ref(preds, labels, mask):
    x = preds.astype(jnp.float32)
    y = labels.astype(jnp.float32)
    m = mask.astype(jnp.float32)
    bce = jnp.maximum(x, 0.0) - x * y + jnp.log1p(jnp.exp(-jnp.abs(x)))
    masked = bce * m[:, :, None]
    per_b = jnp.sum(jnp.mean(masked, axis=2), axis=-1)
    return jnp.mean(per_b / (jnp.sum(m) + 1e-10))


def _check(out, ref, rtol, atol):
    assert jnp.allclose(out, ref, rtol=rtol, atol=atol), (out, ref)


if __name__ == "__main__":
    key = jax.random.PRNGKey(0)

    def make(key, B, N, C, dtype=jnp.float32):
        k1, k2, k3, key = jax.random.split(key, 4)
        preds = jax.random.normal(k1, (B, N, C), dtype=jnp.float32).astype(dtype)
        labels = jax.random.bernoulli(k2, 0.5, (B, N, C)).astype(dtype)
        mask = jax.random.bernoulli(k3, 0.7, (B, N)).astype(jnp.float32)
        return key, preds, labels, mask

    # 1) Small shape matching the module; C = 32 exercises lane folding.
    key, preds, labels, mask = make(key, 2, 8, 32)
    out = bce_loss(preds, labels, mask)
    jax.block_until_ready(out)
    _check(out, bce_loss_ref(preds, labels, mask), 1e-5, 1e-6)

    # 2) Forced small row tiles + forced 2 partials: multi-step accumulation,
    #    ragged last tile, clamped phantom tile on the parallel axis.
    key, preds, labels, mask = make(key, 4, 5, 128)
    out = bce_loss(preds, labels, mask, block_rows=8, num_partials=2)
    jax.block_until_ready(out)
    _check(out, bce_loss_ref(preds, labels, mask), 1e-5, 1e-6)

    # 3) bf16 inputs: bf16-throughout elementwise/EUP/MXU path (f32 accumulate)
    #    on v6e/v7x, f32 fallback on v5e.
    key, preds, labels, mask = make(key, 2, 8, 32, dtype=jnp.bfloat16)
    out = bce_loss(preds, labels, mask)
    jax.block_until_ready(out)
    _check(out, bce_loss_ref(preds, labels, mask), 2e-2, 2e-3)

    # 4) C = 48 (128 % C != 0): gcd-based folding to width 384.
    key, preds, labels, mask = make(key, 2, 8, 48)
    out = bce_loss(preds, labels, mask)
    jax.block_until_ready(out)
    _check(out, bce_loss_ref(preds, labels, mask), 1e-5, 1e-6)

    # 5) C = 200 with B*N = 6: partial-folding fallback (groups=2, width=400).
    key, preds, labels, mask = make(key, 2, 3, 200)
    out = bce_loss(preds, labels, mask)
    jax.block_until_ready(out)
    _check(out, bce_loss_ref(preds, labels, mask), 1e-5, 1e-6)

    print("KERNEL_OK")
</pallas_src>

<mosaic_0001>
module attributes {stable_mosaic.version = 11 : i64} {
  func.func @_bce_partial_kernel(%arg0: i32, %arg1: i32, %arg2: memref<128x4xf32, #tpu.memory_space<vmem>>, %arg3: memref<4x128xf32, #tpu.memory_space<vmem>>, %arg4: memref<4x128xf32, #tpu.memory_space<vmem>>, %arg5: memref<4x4xf32, #tpu.memory_space<vmem>>, %arg6: memref<1x2xf32, #tpu.memory_space<smem>>, %arg7: memref<1x4xf32, #tpu.memory_space<vmem>>, %arg8: memref<1x4xf32, #tpu.memory_space<vmem>>) attributes {dimension_semantics = [#tpu.dimension_semantics<parallel>, #tpu.dimension_semantics<arbitrary>], iteration_bounds = array<i64: 1, 1>, scalar_prefetch = 0 : i64, scratch_operands = 2 : i64, tpu.core_type = #tpu.core_type<tc>, window_params = [{pipeline_mode = #tpu.pipeline_mode<synchronous>, transform_indices = @transform_0, window_bounds = array<i64: 128, 4>}, {transform_indices = @transform_1, window_bounds = array<i64: 4, 128>}, {transform_indices = @transform_2, window_bounds = array<i64: 4, 128>}, {transform_indices = @transform_3, window_bounds = array<i64: 4, 4>}, {transform_indices = @transform_4, window_bounds = array<i64: 1, 2>}]} {
    %c0_i32 = arith.constant 0 : i32
    %0 = arith.cmpi eq, %arg1, %c0_i32 : i32
    %1 = arith.extui %0 : i1 to i32
    %c0_i32_0 = arith.constant 0 : i32
    %2 = arith.cmpi ne, %1, %c0_i32_0 : i32
    scf.if %2 {
      %cst_16 = arith.constant 0.000000e+00 : f32
      %31 = vector.broadcast %cst_16 : f32 to vector<1x4xf32>
      %c0_17 = arith.constant 0 : index
      %c0_18 = arith.constant 0 : index
      %32 = vector.load %arg7[%c0_17, %c0_18] : memref<1x4xf32, #tpu.memory_space<vmem>>, vector<1x4xf32>
      tpu.vector_store %arg7[%c0_17, %c0_18], %31 {strides = array<i32>} : memref<1x4xf32, #tpu.memory_space<vmem>>, vector<1x4xf32>,
      %cst_19 = arith.constant 0.000000e+00 : f32
      %33 = vector.broadcast %cst_19 : f32 to vector<1x4xf32>
      %c0_20 = arith.constant 0 : index
      %c0_21 = arith.constant 0 : index
      %34 = vector.load %arg8[%c0_20, %c0_21] : memref<1x4xf32, #tpu.memory_space<vmem>>, vector<1x4xf32>
      tpu.vector_store %arg8[%c0_20, %c0_21], %33 {strides = array<i32>} : memref<1x4xf32, #tpu.memory_space<vmem>>, vector<1x4xf32>,
    } else {
    }
    %c0 = arith.constant 0 : index
    %c0_1 = arith.constant 0 : index
    %3 = vector.load %arg3[%c0, %c0_1] : memref<4x128xf32, #tpu.memory_space<vmem>>, vector<4x128xf32>
    %c0_2 = arith.constant 0 : index
    %c0_3 = arith.constant 0 : index
    %4 = vector.load %arg4[%c0_2, %c0_3] : memref<4x128xf32, #tpu.memory_space<vmem>>, vector<4x128xf32>
    %c0_4 = arith.constant 0 : index
    %c0_5 = arith.constant 0 : index
    %5 = vector.load %arg2[%c0_4, %c0_5] : memref<128x4xf32, #tpu.memory_space<vmem>>, vector<128x4xf32>
    %cst = arith.constant 0.000000e+00 : f32
    %6 = vector.broadcast %cst : f32 to vector<4x128xf32>
    %7 = arith.maximumf %3, %6 : vector<4x128xf32>
    %8 = arith.mulf %3, %4 : vector<4x128xf32>
    %9 = arith.subf %7, %8 : vector<4x128xf32>
    %10 = math.absf %3 : vector<4x128xf32>
    %cst_6 = arith.constant 0.000000e+00 : f32
    %11 = vector.broadcast %cst_6 : f32 to vector<4x128xf32>
    %12 = arith.subf %11, %10 : vector<4x128xf32>
    %13 = math.exp %12 : vector<4x128xf32>
    %14 = math.log1p %13 : vector<4x128xf32>
    %15 = arith.addf %9, %14 : vector<4x128xf32>
    %cst_7 = arith.constant dense<0.000000e+00> : vector<4x4xf32>
    %16 = tpu.matmul %15, %5, %cst_7 {dimension_numbers = #tpu.dot_dimension_numbers<[1], [0], [0], [1], [0, 0, 1, 1], [], []>} : vector<4x128xf32>, vector<128x4xf32>, vector<4x4xf32> -> vector<4x4xf32>
    %c0_8 = arith.constant 0 : index
    %c0_9 = arith.constant 0 : index
    %17 = vector.load %arg5[%c0_8, %c0_9] : memref<4x4xf32, #tpu.memory_space<vmem>>, vector<4x4xf32>
    %c1_i32 = arith.constant 1 : i32
    %18 = arith.muli %arg0, %c1_i32 : i32
    %19 = arith.addi %18, %arg1 : i32
    %c4_i32 = arith.constant 4 : i32
    %20 = arith.muli %19, %c4_i32 : i32
    %c4_i32_10 = arith.constant 4 : i32
    %21 = arith.addi %20, %c4_i32_10 : i32
    %c4_i32_11 = arith.constant 4 : i32
    %22 = arith.cmpi sle, %21, %c4_i32_11 : i32
    %23 = arith.extui %22 : i1 to i32
    %c0_i32_12 = arith.constant 0 : i32
    %24 = arith.cmpi ne, %23, %c0_i32_12 : i32
    scf.if %24 {
      %c0_16 = arith.constant 0 : index
      %c0_17 = arith.constant 0 : index
      %31 = vector.load %arg7[%c0_16, %c0_17] : memref<1x4xf32, #tpu.memory_space<vmem>>, vector<1x4xf32>
      %32 = arith.mulf %16, %17 : vector<4x4xf32>
      %cst_18 = arith.constant dense<0.000000e+00> : vector<4xf32>
      %33 = vector.multi_reduction <add>, %32, %cst_18 [0] : vector<4x4xf32> to vector<4xf32>
      %34 = vector.shape_cast %33 : vector<4xf32> to vector<1x4xf32>
      %35 = arith.addf %31, %34 : vector<1x4xf32>
      %c0_19 = arith.constant 0 : index
      %c0_20 = arith.constant 0 : index
      %36 = vector.load %arg7[%c0_19, %c0_20] : memref<1x4xf32, #tpu.memory_space<vmem>>, vector<1x4xf32>
      tpu.vector_store %arg7[%c0_19, %c0_20], %35 {strides = array<i32>} : memref<1x4xf32, #tpu.memory_space<vmem>>, vector<1x4xf32>,
      %c0_21 = arith.constant 0 : index
      %c0_22 = arith.constant 0 : index
      %37 = vector.load %arg8[%c0_21, %c0_22] : memref<1x4xf32, #tpu.memory_space<vmem>>, vector<1x4xf32>
      %cst_23 = arith.constant dense<0.000000e+00> : vector<4xf32>
      %38 = vector.multi_reduction <add>, %17, %cst_23 [0] : vector<4x4xf32> to vector<4xf32>
      %39 = vector.shape_cast %38 : vector<4xf32> to vector<1x4xf32>
      %40 = arith.addf %37, %39 : vector<1x4xf32>
      %c0_24 = arith.constant 0 : index
      %c0_25 = arith.constant 0 : index
      %41 = vector.load %arg8[%c0_24, %c0_25] : memref<1x4xf32, #tpu.memory_space<vmem>>, vector<1x4xf32>
      tpu.vector_store %arg8[%c0_24, %c0_25], %40 {strides = array<i32>} : memref<1x4xf32, #tpu.memory_space<vmem>>, vector<1x4xf32>,
    } else {
    }
    %true = arith.constant true
    %25 = arith.xori %22, %true : i1
    %26 = arith.extui %25 : i1 to i32
    %c0_i32_13 = arith.constant 0 : i32
    %27 = arith.cmpi ne, %26, %c0_i32_13 : i32
    scf.if %27 {
      %31 = tpu.iota {dimensions = array<i32: 0>} : vector<4x4xi32>
      %32 = vector.broadcast %20 : i32 to vector<4x4xi32>
      %33 = arith.addi %32, %31 : vector<4x4xi32>
      %c4_i32_16 = arith.constant 4 : i32
      %34 = vector.broadcast %c4_i32_16 : i32 to vector<4x4xi32>
      %35 = arith.cmpi slt, %33, %34 : vector<4x4xi32>
      %c0_17 = arith.constant 0 : index
      %c0_18 = arith.constant 0 : index
      %36 = vector.load %arg7[%c0_17, %c0_18] : memref<1x4xf32, #tpu.memory_space<vmem>>, vector<1x4xf32>
      %37 = arith.mulf %16, %17 : vector<4x4xf32>
      %cst_19 = arith.constant 0.000000e+00 : f32
      %38 = vector.broadcast %cst_19 : f32 to vector<4x4xf32>
      %39 = arith.select %35, %37, %38 : vector<4x4xi1>, vector<4x4xf32>
      %cst_20 = arith.constant dense<0.000000e+00> : vector<4xf32>
      %40 = vector.multi_reduction <add>, %39, %cst_20 [0] : vector<4x4xf32> to vector<4xf32>
      %41 = vector.shape_cast %40 : vector<4xf32> to vector<1x4xf32>
      %42 = arith.addf %36, %41 : vector<1x4xf32>
      %c0_21 = arith.constant 0 : index
      %c0_22 = arith.constant 0 : index
      %43 = vector.load %arg7[%c0_21, %c0_22] : memref<1x4xf32, #tpu.memory_space<vmem>>, vector<1x4xf32>
      tpu.vector_store %arg7[%c0_21, %c0_22], %42 {strides = array<i32>} : memref<1x4xf32, #tpu.memory_space<vmem>>, vector<1x4xf32>,
      %c0_23 = arith.constant 0 : index
      %c0_24 = arith.constant 0 : index
      %44 = vector.load %arg8[%c0_23, %c0_24] : memref<1x4xf32, #tpu.memory_space<vmem>>, vector<1x4xf32>
      %cst_25 = arith.constant 0.000000e+00 : f32
      %45 = vector.broadcast %cst_25 : f32 to vector<4x4xf32>
      %46 = arith.select %35, %17, %45 : vector<4x4xi1>, vector<4x4xf32>
      %cst_26 = arith.constant dense<0.000000e+00> : vector<4xf32>
      %47 = vector.multi_reduction <add>, %46, %cst_26 [0] : vector<4x4xf32> to vector<4xf32>
      %48 = vector.shape_cast %47 : vector<4xf32> to vector<1x4xf32>
      %49 = arith.addf %44, %48 : vector<1x4xf32>
      %c0_27 = arith.constant 0 : index
      %c0_28 = arith.constant 0 : index
      %50 = vector.load %arg8[%c0_27, %c0_28] : memref<1x4xf32, #tpu.memory_space<vmem>>, vector<1x4xf32>
      tpu.vector_store %arg8[%c0_27, %c0_28], %49 {strides = array<i32>} : memref<1x4xf32, #tpu.memory_space<vmem>>, vector<1x4xf32>,
    } else {
    }
    %c0_i32_14 = arith.constant 0 : i32
    %28 = arith.cmpi eq, %arg1, %c0_i32_14 : i32
    %29 = arith.extui %28 : i1 to i32
    %c0_i32_15 = arith.constant 0 : i32
    %30 = arith.cmpi ne, %29, %c0_i32_15 : i32
    scf.if %30 {
      %c0_16 = arith.constant 0 : index
      %c0_17 = arith.constant 0 : index
      %31 = vector.load %arg7[%c0_16, %c0_17] : memref<1x4xf32, #tpu.memory_space<vmem>>, vector<1x4xf32>
      %32 = vector.shape_cast %31 : vector<1x4xf32> to vector<1x1x4xf32>
      %cst_18 = arith.constant dense<0.000000e+00> : vector<1xf32>
      %33 = vector.multi_reduction <add>, %32, %cst_18 [1, 2] : vector<1x1x4xf32> to vector<1xf32>
      %34 = vector.shape_cast %33 : vector<1xf32> to vector<1x1x1xf32>
      %35 = vector.extract %34[0, 0, 0] : f32 from vector<1x1x1xf32>
      %c0_19 = arith.constant 0 : index
      %c0_20 = arith.constant 0 : index
      %36 = memref.load %arg6[%c0_19, %c0_20] : memref<1x2xf32, #tpu.memory_space<smem>>
      memref.store %35, %arg6[%c0_19, %c0_20] : memref<1x2xf32, #tpu.memory_space<smem>>
      %c0_21 = arith.constant 0 : index
      %c0_22 = arith.constant 0 : index
      %37 = vector.load %arg8[%c0_21, %c0_22] : memref<1x4xf32, #tpu.memory_space<vmem>>, vector<1x4xf32>
      %38 = vector.shape_cast %37 : vector<1x4xf32> to vector<1x1x4xf32>
      %cst_23 = arith.constant dense<0.000000e+00> : vector<1xf32>
      %39 = vector.multi_reduction <add>, %38, %cst_23 [1, 2] : vector<1x1x4xf32> to vector<1xf32>
      %40 = vector.shape_cast %39 : vector<1xf32> to vector<1x1x1xf32>
      %41 = vector.extract %40[0, 0, 0] : f32 from vector<1x1x1xf32>
      %c0_24 = arith.constant 0 : index
      %c1 = arith.constant 1 : index
      %42 = memref.load %arg6[%c0_24, %c1] : memref<1x2xf32, #tpu.memory_space<smem>>
      memref.store %41, %arg6[%c0_24, %c1] : memref<1x2xf32, #tpu.memory_space<smem>>
    } else {
    }
    return
  }
  func.func @transform_0(%arg0: i32, %arg1: i32) -> (i32, i32) {
    %c0_i32 = arith.constant 0 : i32
    %c0_i32_0 = arith.constant 0 : i32
    %c0_i32_1 = arith.constant 0 : i32
    return %c0_i32, %c0_i32_0 : i32, i32
  }
  func.func @transform_1(%arg0: i32, %arg1: i32) -> (i32, i32) {
    %c1_i32 = arith.constant 1 : i32
    %0 = arith.muli %arg0, %c1_i32 : i32
    %1 = arith.addi %0, %arg1 : i32
    %c0_i32 = arith.constant 0 : i32
    %2 = arith.minsi %1, %c0_i32 : i32
    %c0_i32_0 = arith.constant 0 : i32
    %c0_i32_1 = arith.constant 0 : i32
    return %2, %c0_i32_0 : i32, i32
  }
  func.func @transform_2(%arg0: i32, %arg1: i32) -> (i32, i32) {
    %c1_i32 = arith.constant 1 : i32
    %0 = arith.muli %arg0, %c1_i32 : i32
    %1 = arith.addi %0, %arg1 : i32
    %c0_i32 = arith.constant 0 : i32
    %2 = arith.minsi %1, %c0_i32 : i32
    %c0_i32_0 = arith.constant 0 : i32
    %c0_i32_1 = arith.constant 0 : i32
    return %2, %c0_i32_0 : i32, i32
  }
  func.func @transform_3(%arg0: i32, %arg1: i32) -> (i32, i32) {
    %c1_i32 = arith.constant 1 : i32
    %0 = arith.muli %arg0, %c1_i32 : i32
    %1 = arith.addi %0, %arg1 : i32
    %c0_i32 = arith.constant 0 : i32
    %2 = arith.minsi %1, %c0_i32 : i32
    %c0_i32_0 = arith.constant 0 : i32
    %c0_i32_1 = arith.constant 0 : i32
    return %2, %c0_i32_0 : i32, i32
  }
  func.func @transform_4(%arg0: i32, %arg1: i32) -> (i32, i32) {
    %c0_i32 = arith.constant 0 : i32
    %c0_i32_0 = arith.constant 0 : i32
    return %arg0, %c0_i32 : i32, i32
  }
}

</mosaic_0001>

<bundles_post_ra>
// kernel: tpu_custom_call.1
= control target key start
LH: loop header
LB: loop body
LE: loop exit
PB: predicated region body
PF: predicated region fallthrough
CT: control target
= control target key end

     0   :  { %s406_s0 = inlined_call_operand.vmem [shape: f32[128,4], index: 0, kind: input, shape index: {}]   ;;  %s407_s1 = inlined_call_operand.vmem [shape: f32[4,128], index: 1, kind: input, shape index: {}]   ;;  %s408_s2 = inlined_call_operand.vmem [shape: f32[4,128], index: 2, kind: input, shape index: {}]   ;;  %s409_s3 = inlined_call_operand.vmem [shape: f32[4,4], index: 3, kind: input, shape index: {}]   ;;  %s410_s4 = inlined_call_operand.hbm [shape: f32[1,2], index: 4, kind: output, shape index: {}]  }
   0x1   :  { %v123_v0 = vld [vmem:[%s406_s0 + $0x78] sm:$0xff]  ;;  %v122_v1 = vld [vmem:[%s406_s0 + $0x70] sm:$0xff]  ;;  %v121_v2 = vld [vmem:[%s406_s0 + $0x68] sm:$0xff] }
   0x2   :  { %141 = vmatpush.msra.mxu0 %v123_v0  ;;  %v120_v3 = vld [vmem:[%s406_s0 + $0x60] sm:$0xff]  ;;  %v119_v5 = vld [vmem:[%s406_s0 + $0x58] sm:$0xff] }
   0x3   :  { %v106_v4 = vld [vmem:[%s407_s1] sm:$0xf] }
   0x4   :  { %142 = vmatpush.msra.mxu0 %v122_v1  ;;  %v127_v6 = vand.u32 2147483647, %v106_v4 }
   0x6   :  { %143 = vmatpush.msra.mxu0 %v121_v2 }
   0x7   :  { %9 = vsyncpa [#allocation5], 0  ;;  %v118_v7 = vld [vmem:[%s406_s0 + $0x50] sm:$0xff]  ;;  %v128_v8 = vsub.f32 0.0, %v127_v6  ;;  %v117_v9 = vld [vmem:[%s406_s0 + $0x48] sm:$0xff]  ;;  %v124_v22 = vmax.f32 %v106_v4, 0.0 }
   0x8   :  { %144 = vmatpush.msra.mxu0 %v120_v3  ;;  %v116_v11 = vld [vmem:[%s406_s0 + $0x40] sm:$0xff]  ;;  %v115_v12 = vld [vmem:[%s406_s0 + $0x38] sm:$0xff]  ;;  %v114_v13 = vld [vmem:[%s406_s0 + $0x30] sm:$0xff]  ;;  %vm103_vm1 = vcmask 24576   ;;  %v313_v34 = vmov 0.0   ;;  %vm171_vm2 = vcmask 27648  }
   0x9   :  { %v129_v10 = vmul.f32 1.442695, %v128_v8  ;;  %v113_v15 = vld [vmem:[%s406_s0 + $0x28] sm:$0xff]  ;;  %v112_v18 = vld [vmem:[%s406_s0 + $0x20] sm:$0xff]  ;;  %v111_v20 = vld [vmem:[%s406_s0 + $0x18] sm:$0xff]  ;;  %s261_s26 = sshll.u32 %s410_s4, 4  ;;  %s262_s26 = int_to_ptr.hbm [resolvable:$true] %s261_s26 }
   0xa   :  { %145 = vmatpush.msra.mxu0 %v119_v5  ;;  %v107_v19 = vld [vmem:[%s408_s2] sm:$0xf]  ;;  %v110_v25 = vld [vmem:[%s406_s0 + $0x10] sm:$0xff]  ;;  %v109_v26 = vld [vmem:[%s406_s0 + $0x8] sm:$0xff]  ;;  %104 = vst.msk [vmem:[#allocation2] sm:$0x1] %vm103_vm1, %v313_v34 }
   0xb   :  { %295 = vpow2.f32 %v129_v10  ;;  %v125_v23 = vmul.f32 %v107_v19, %v106_v4  ;;  %v108_v30 = vld [vmem:[%s406_s0] sm:$0xff]  ;;  %105 = vst.msk [vmem:[#allocation3] sm:$0x1] %vm103_vm1, %v313_v34  ;;  %s314_s28 = smov [#allocation4]  }
   0xc   :  { %146 = vmatpush.msra.mxu0 %v118_v7  ;;  %v161_v35 = vld [vmem:[%s409_s3] sm:$0xf] }
   0xd   :  { %v126_v29 = vsub.f32 %v124_v22, %v125_v23  ;;  %v183_v36 = vsel %vm171_vm2, %v161_v35, 0.0 }
   0xe   :  { %147 = vmatpush.msra.mxu0 %v117_v9  ;;  %v184_v37 = vrot.slane %v183_v36, 4 }
  0x10   :  { %148 = vmatpush.msra.mxu0 %v116_v11  ;;  %v185_v38 = vadd.f32 %v184_v37, %v183_v36 }
  0x11   :  { %v296_v14 = vpop.eup %295  ;;  %v169_v53 = vld [vmem:[#allocation2] sm:$0x1] }
  0x12   :  { %149 = vmatpush.msra.mxu0 %v115_v12  ;;  %v131_v16 = vadd.f32 1.0, %v296_v14  ;;  %v134_v17 = vmul.f32 -0.5, %v296_v14  ;;  %v137_v24 = vand.u32 2147483647, %v296_v14  ;;  %v186_v39 = vrot.slane %v185_v38, 2 }
  0x13   :  { %v182_v43 = vld [vmem:[#allocation3] sm:$0x1] }
  0x14   :  { %150 = vmatpush.msra.mxu0 %v114_v13  ;;  %297 = vlog2.f32 %v131_v16  ;;  %v135_v21 = vadd.f32 1.0, %v134_v17  ;;  %vm138_vm0 = vcmp.lt.f32.partialorder %v137_v24, 0.0004427343  ;;  %v187_v40 = vadd.f32 %v186_v39, %v185_v38 }
  0x16   :  { %151 = vmatpush.msra.mxu0 %v113_v15  ;;  %v136_v27 = vmul.f32 %v296_v14, %v135_v21  ;;  %v188_v41 = vrot.slane %v187_v40, 1 }
  0x18   :  { %152 = vmatpush.msra.mxu0 %v112_v18  ;;  %v189_v42 = vadd.f32 %v188_v41, %v187_v40 }
  0x1a   :  { %153 = vmatpush.msra.mxu0 %v111_v20  ;;  %v298_v28 = vpop.eup %297  ;;  %v190_v44 = vadd.f32 %v189_v42, %v182_v43 }
  0x1b   :  { %v133_v31 = vmul.f32 0.6931472, %v298_v28 }
  0x1c   :  { %154 = vmatpush.msra.mxu0 %v110_v25  ;;  %191 = vst.msk [vmem:[#allocation3] sm:$0x1] %vm103_vm1, %v190_v44 }
  0x1d   :  { %v139_v32 = vsel %vm138_vm0, %v136_v27, %v133_v31 }
  0x1e   :  { %155 = vmatpush.msra.mxu0 %v109_v26  ;;  %v140_v33 = vadd.f32 %v139_v32, %v126_v29 }
  0x20   :  { %156 = vmatpush.msra.mxu0 %v108_v30 }
  0x21   :  { %157 = vmatmul.f32.vlgmr.msra.gmra.mxu0 %v140_v33 }
  0x23   :  { %v243_v58 = vld [vmem:[#allocation3] sm:$0x1] }
  0x24   :  { %v244_v59 = vsel %vm103_vm1, %v243_v58, 0.0 }
  0x9e   :  { %v158_v45 = vpop.f32.mrf.mxu0 }
  0x9f   :  { %v170_v46 = vmul.f32 %v161_v35, %v158_v45 }
  0xa1   :  { %v172_v47 = vsel %vm171_vm2, %v170_v46, 0.0 }
  0xa2   :  { %v173_v48 = vrot.slane %v172_v47, 4 }
  0xa4   :  { %v174_v49 = vadd.f32 %v173_v48, %v172_v47 }
  0xa6   :  { %v175_v50 = vrot.slane %v174_v49, 2 }
  0xa8   :  { %v176_v51 = vadd.f32 %v175_v50, %v174_v49 }
  0xaa   :  { %v177_v52 = vrot.slane %v176_v51, 1 }
  0xac   :  { %v178_v54 = vadd.f32 %v177_v52, %v176_v51 }
  0xae   :  { %v179_v55 = vadd.f32 %v178_v54, %v169_v53 }
  0xb0   :  { %181 = vst.msk [vmem:[#allocation2] sm:$0x1] %vm103_vm1, %v179_v55 }
  0xb7   :  { %v229_v56 = vld [vmem:[#allocation2] sm:$0x1] }
  0xb8   :  { %v231_v57 = vsel %vm103_vm1, %v229_v56, 0.0 }
  0xb9   :  { %232 = vadd.xlane.f32.xlu0 %v231_v57 }
  0xc1   :  { %245 = vadd.xlane.f32.xlu0 %v244_v59 }
 0x12c   :  { %v233_v60 = vpop.xlane.xlu0 %232 }
 0x12d   :  { %v234_v61 = vrot.slane %v233_v60, 4 }
 0x12f   :  { %v235_v62 = vadd.f32 %v234_v61, %v233_v60 }
 0x131   :  { %v236_v63 = vrot.slane %v235_v62, 2 }
 0x133   :  { %v237_v0 = vadd.f32 %v236_v63, %v235_v62 }
 0x134   :  { %v246_v1 = vpop.xlane.xlu0 %245 }
 0x135   :  { %v247_v2 = vrot.slane %v246_v1, 4  ;;  %v238_v3 = vrot.slane %v237_v0, 1 }
 0x137   :  { %v248_v4 = vadd.f32 %v247_v2, %v246_v1  ;;  %v239_v5 = vadd.f32 %v238_v3, %v237_v0 }
 0x139   :  { %v249_v6 = vrot.slane %v248_v4, 2  ;;  %289 = vpush %v239_v5 }
 0x13b   :  { %v250_v7 = vadd.f32 %v249_v6, %v248_v4 }
 0x13d   :  { %v251_v8 = vrot.slane %v250_v7, 1 }
 0x13f   :  { %v252_v9 = vadd.f32 %v251_v8, %v250_v7 }
 0x141   :  { %291 = vpush %v252_v9 }
 0x16a   :  { %s290_s0 = spop %289 }
 0x16b   :  { %242 = sst [smem:[#allocation4]] %s290_s0 }
 0x172   :  { %s292_s27 = spop %291 }
 0x173   :  { %255 = sst [smem:[#allocation4 + $0x1]] %s292_s27 }
 0x174   :  { %264 = dma.smem_to_hbm %s314_s28, 16, %s262_s26, [#allocation5]  }
 0x175   :  { %311 = dma.done.wait [#allocation5], 16  }
 0x176   :  { %312 = vsyncadd [#allocation5], 4294967280 }
 0x177   :  { %269 = sfence }
 0x178   :  { %270 = vsyncpa [#allocation5], 1 }

</bundles_post_ra>
